<compile_context>
chip_gen: v5e
topology: v5e:2x2
jax: 0.10.0
libtpu: 0.0.40
codegen_flags: <defaults>
</compile_context>

<pallas_src>
import functools
import math

import numpy as np
import jax
import jax.numpy as jnp
from jax.experimental import pallas as pl
from jax.experimental.pallas import tpu as pltpu

SIZES = (1, 2, 3, 6)


def _round_up(v: int, m: int) -> int:
    return ((v + m - 1) // m) * m


def _adaptive_avg_pool_matrix(in_size: int, out_size: int) -> np.ndarray:
    """PyTorch AdaptiveAvgPool 1-D averaging operator, shape (out_size, in_size)."""
    P = np.zeros((out_size, in_size), dtype=np.float32)
    for i in range(out_size):
        start = (i * in_size) // out_size
        end = math.ceil((i + 1) * in_size / out_size)
        P[i, start:end] = 1.0 / (end - start)
    return P


def _bilinear_upsample_matrix(in_size: int, out_size: int) -> np.ndarray:
    """F.interpolate(mode='bilinear', align_corners=True) separable 1-D factor."""
    U = np.zeros((out_size, in_size), dtype=np.float32)
    if in_size == 1:
        U[:, 0] = 1.0
        return U
    if out_size == 1:
        U[0, 0] = 1.0
        return U
    scale = (in_size - 1) / (out_size - 1)
    for o in range(out_size):
        src = o * scale
        i0 = min(int(math.floor(src)), in_size - 1)
        i1 = min(i0 + 1, in_size - 1)
        frac = src - i0
        U[o, i0] += 1.0 - frac
        U[o, i1] += frac
    return U


def _pick_nb(n: int, c: int) -> int:
    """Largest batch block Nb (divisor of n) s.t. Nb*C fills ~128 MXU rows and the
    block's sublane dim is 8-aligned (or the block covers the full array)."""
    candidates = [nb for nb in range(1, n + 1) if n % nb == 0]
    good = [nb for nb in candidates
            if nb * c <= max(128, c) and ((nb * c) % 8 == 0 or nb == n)]
    if good:
        return max(good)
    return n  # full-array block is always a legal BlockSpec


def _psp_kernel(x_ref, pT_ref, w_ref, mask_ref, u_ref, b_ref, o_ref, *, nb, c):
    # x_ref:    (Nb*C, HWp)   bf16   batch-block of input, spatial flattened (lane-dense)
    # pT_ref:   (HWp, S2p)    bf16   stacked pool operators, transposed
    # w_ref:    (C, C)        bf16   stacked 1x1-conv weights (row group k = branch k)
    # mask_ref: (C, S2p)      f32    block-diagonal branch mask
    # u_ref:    (S2p, HWp)    bf16   stacked upsample operators (row group k = branch k)
    # b_ref:    (Nb*C, 1)     f32    per-channel bias, tiled over the batch block
    # o_ref:    (Nb*C, HWp)   f32    this block's slice of the concatenated output
    x = x_ref[...]
    # Pool all K branches at once:  (Nb*C, HWp) @ (HWp, S2p) -> f32
    pooled = jnp.dot(x, pT_ref[...], preferred_element_type=jnp.float32)
    w = w_ref[...]
    mask = mask_ref[...]
    ys = []
    for b in range(nb):  # tiny per-batch 1x1 conv (static unroll; conv is the small leg)
        pb = pooled[b * c:(b + 1) * c, :].astype(x.dtype)        # (C, S2p) bf16
        yb = jnp.dot(w, pb, preferred_element_type=jnp.float32)  # (C, S2p) f32
        ys.append(yb * mask)                                     # keep diagonal blocks
    y = ys[0] if nb == 1 else jnp.concatenate(ys, axis=0)        # (Nb*C, S2p) f32
    # Upsample all K branches at once:  (Nb*C, S2p) @ (S2p, HWp) -> f32
    out = jnp.dot(y.astype(x.dtype), u_ref[...], preferred_element_type=jnp.float32)
    o_ref[...] = (out + b_ref[...]).astype(o_ref.dtype)


def psp_forward(x, weights, biases, sizes=SIZES, compute_dtype=jnp.bfloat16):
    """x: (N, C, H, W) f32; weights: (K, C//K, C); biases: (K, C//K). Returns (N, C, H, W)."""
    N, C, H, W = x.shape
    K = len(sizes)
    assert C % K == 0, "in_ch must be divisible by len(sizes)"
    Cout = C // K
    HW = H * W
    HW_pad = _round_up(HW, 128)                      # lane-dense blocks / stores
    s2 = [s * s for s in sizes]
    offs = np.concatenate([[0], np.cumsum(s2)]).astype(np.int64)
    S2 = int(offs[-1])                               # sum(s^2) = 50 for (1,2,3,6)
    S2_pad = _round_up(S2, 8)                        # sublane-align the small dim

    # ---- glue: build the small factored operators (numpy, trace time) ----
    p_t = np.zeros((HW_pad, S2_pad), np.float32)     # stacked P_k^T
    u_bd = np.zeros((S2_pad, HW_pad), np.float32)    # stacked U_k^T (block rows)
    mask = np.zeros((C, S2_pad), np.float32)         # branch block-diagonal mask
    for k, s in enumerate(sizes):
        Py = _adaptive_avg_pool_matrix(H, s)         # (s, H)
        Px = _adaptive_avg_pool_matrix(W, s)         # (s, W)
        Uy = _bilinear_upsample_matrix(s, H)         # (H, s)
        Ux = _bilinear_upsample_matrix(s, W)         # (W, s)
        Pk = np.kron(Py, Px)                         # (s^2, HW), matches h*W+w flattening
        Uk = np.kron(Uy, Ux)                         # (HW, s^2)
        o0, o1 = int(offs[k]), int(offs[k + 1])
        p_t[:HW, o0:o1] = Pk.T
        u_bd[o0:o1, :HW] = Uk.T
        mask[k * Cout:(k + 1) * Cout, o0:o1] = 1.0

    # ---- batch blocking so the MXU row dim is filled even for small C ----
    nb = _pick_nb(N, C)

    x2d = x.reshape(N * C, HW).astype(compute_dtype)
    if HW_pad != HW:
        x2d = jnp.pad(x2d, ((0, 0), (0, HW_pad - HW)))
    w_big = weights.reshape(C, C).astype(compute_dtype)            # row group k = branch k
    b_tiled = jnp.tile(biases.reshape(C, 1), (nb, 1)).astype(jnp.float32)
    pT = jnp.asarray(p_t).astype(compute_dtype)
    U = jnp.asarray(u_bd).astype(compute_dtype)
    M = jnp.asarray(mask)                                          # f32 mask

    # ---- explicit VMEM budget from the block sizes (2x for double buffering) ----
    isz = jnp.dtype(compute_dtype).itemsize
    blk_bytes = (nb * C * HW_pad * isz            # x block
                 + HW_pad * S2_pad * isz          # P^T
                 + C * C * isz                    # W
                 + C * S2_pad * 4                 # mask
                 + S2_pad * HW_pad * isz          # U
                 + nb * C * 4                     # bias
                 + nb * C * HW_pad * 4)           # out block (f32)
    vmem_limit = int(max(4 * 1024 * 1024, 2 * blk_bytes + (1 << 20)))

    kernel = functools.partial(_psp_kernel, nb=nb, c=C)

    out = pl.pallas_call(
        kernel,
        out_shape=jax.ShapeDtypeStruct((N * C, HW_pad), jnp.float32),
        grid_spec=pltpu.PrefetchScalarGridSpec(
            num_scalar_prefetch=0,
            grid=(N // nb,),
            in_specs=[
                pl.BlockSpec((nb * C, HW_pad), lambda i: (i, 0)),   # x
                pl.BlockSpec((HW_pad, S2_pad), lambda i: (0, 0)),   # P^T (resident)
                pl.BlockSpec((C, C), lambda i: (0, 0)),             # W   (resident)
                pl.BlockSpec((C, S2_pad), lambda i: (0, 0)),        # mask(resident)
                pl.BlockSpec((S2_pad, HW_pad), lambda i: (0, 0)),   # U   (resident)
                pl.BlockSpec((nb * C, 1), lambda i: (0, 0)),        # bias(resident)
            ],
            out_specs=pl.BlockSpec((nb * C, HW_pad), lambda i: (i, 0)),
        ),
        compiler_params=pltpu.CompilerParams(
            dimension_semantics=("parallel",),
            vmem_limit_bytes=vmem_limit),
    )(x2d, pT, w_big, M, U, b_tiled)

    # (N*C, HW_pad) -> drop lane padding -> (N, C, H, W); channel order matches torch.cat
    return out[:, :HW].reshape(N, C, H, W).astype(x.dtype)


def psp_reference(x, weights, biases, sizes=SIZES):
    """Pure-JAX f32 reference following the PyTorch op order: pool -> 1x1 conv -> upsample."""
    N, C, H, W = x.shape
    feas = []
    for k, s in enumerate(sizes):
        Py = jnp.asarray(_adaptive_avg_pool_matrix(H, s))
        Px = jnp.asarray(_adaptive_avg_pool_matrix(W, s))
        Uy = jnp.asarray(_bilinear_upsample_matrix(s, H))
        Ux = jnp.asarray(_bilinear_upsample_matrix(s, W))
        pooled = jnp.einsum('yh,nchw,xw->ncyx', Py, x, Px)
        conv = jnp.einsum('oc,ncyx->noyx', weights[k], pooled) + biases[k][None, :, None, None]
        up = jnp.einsum('yh,nchw,xw->ncyx', Uy, conv, Ux)
        feas.append(up)
    return jnp.concatenate(feas, axis=1)


if __name__ == "__main__":
    N, C, H, W = 2, 8, 16, 16
    K = len(SIZES)
    Cout = C // K

    key = jax.random.PRNGKey(0)
    kx, kw, kb = jax.random.split(key, 3)
    x = jax.random.normal(kx, (N, C, H, W), dtype=jnp.float32)
    # Deterministic synthetic Conv2d(C, C//K, 1) parameters (kaiming-uniform-like scale).
    bound = 1.0 / math.sqrt(C)
    weights = jax.random.uniform(kw, (K, Cout, C), jnp.float32, -bound, bound)
    biases = jax.random.uniform(kb, (K, Cout), jnp.float32, -bound, bound)

    out = jax.block_until_ready(psp_forward(x, weights, biases))
    ref = jax.block_until_ready(psp_reference(x, weights, biases))

    assert out.shape == (N, C, H, W), out.shape
    max_err = float(jnp.max(jnp.abs(out - ref)))
    # bf16 matmul inputs with f32 accumulation -> relaxed (but tight for bf16) tolerance.
    assert jnp.allclose(out, ref, rtol=2e-2, atol=1e-2), max_err
    print("KERNEL_OK")
</pallas_src>

<mosaic_0001>
module attributes {stable_mosaic.version = 11 : i64} {
  func.func @_psp_kernel(%arg0: i32, %arg1: memref<16x256xbf16, #tpu.memory_space<vmem>>, %arg2: memref<256x56xbf16, #tpu.memory_space<vmem>>, %arg3: memref<8x8xbf16, #tpu.memory_space<vmem>>, %arg4: memref<8x56xf32, #tpu.memory_space<vmem>>, %arg5: memref<56x256xbf16, #tpu.memory_space<vmem>>, %arg6: memref<16x1xf32, #tpu.memory_space<vmem>>, %arg7: memref<16x256xf32, #tpu.memory_space<vmem>>) attributes {dimension_semantics = [#tpu.dimension_semantics<parallel>], iteration_bounds = array<i64: 1>, scalar_prefetch = 0 : i64, scratch_operands = 0 : i64, tpu.core_type = #tpu.core_type<tc>, window_params = [{transform_indices = @transform_0, window_bounds = array<i64: 16, 256>}, {pipeline_mode = #tpu.pipeline_mode<synchronous>, transform_indices = @transform_1, window_bounds = array<i64: 256, 56>}, {pipeline_mode = #tpu.pipeline_mode<synchronous>, transform_indices = @transform_2, window_bounds = array<i64: 8, 8>}, {pipeline_mode = #tpu.pipeline_mode<synchronous>, transform_indices = @transform_3, window_bounds = array<i64: 8, 56>}, {pipeline_mode = #tpu.pipeline_mode<synchronous>, transform_indices = @transform_4, window_bounds = array<i64: 56, 256>}, {pipeline_mode = #tpu.pipeline_mode<synchronous>, transform_indices = @transform_5, window_bounds = array<i64: 16, 1>}, {transform_indices = @transform_6, window_bounds = array<i64: 16, 256>}]} {
    %c0 = arith.constant 0 : index
    %c0_0 = arith.constant 0 : index
    %0 = vector.load %arg1[%c0, %c0_0] : memref<16x256xbf16, #tpu.memory_space<vmem>>, vector<16x256xbf16>
    %c0_1 = arith.constant 0 : index
    %c0_2 = arith.constant 0 : index
    %1 = vector.load %arg2[%c0_1, %c0_2] : memref<256x56xbf16, #tpu.memory_space<vmem>>, vector<256x56xbf16>
    %cst = arith.constant dense<0.000000e+00> : vector<16x56xf32>
    %2 = tpu.matmul %0, %1, %cst {dimension_numbers = #tpu.dot_dimension_numbers<[1], [0], [0], [1], [0, 0, 1, 1], [], []>} : vector<16x256xbf16>, vector<256x56xbf16>, vector<16x56xf32> -> vector<16x56xf32>
    %c0_3 = arith.constant 0 : index
    %c0_4 = arith.constant 0 : index
    %3 = vector.load %arg3[%c0_3, %c0_4] : memref<8x8xbf16, #tpu.memory_space<vmem>>, vector<8x8xbf16>
    %c0_5 = arith.constant 0 : index
    %c0_6 = arith.constant 0 : index
    %4 = vector.load %arg4[%c0_5, %c0_6] : memref<8x56xf32, #tpu.memory_space<vmem>>, vector<8x56xf32>
    %5 = vector.extract_strided_slice %2 {offsets = [0, 0], sizes = [8, 56], strides = [1, 1]} : vector<16x56xf32> to vector<8x56xf32>
    %6 = arith.truncf %5 : vector<8x56xf32> to vector<8x56xbf16>
    %cst_7 = arith.constant dense<0.000000e+00> : vector<8x56xf32>
    %7 = tpu.matmul %3, %6, %cst_7 {dimension_numbers = #tpu.dot_dimension_numbers<[1], [0], [0], [1], [0, 0, 1, 1], [], []>} : vector<8x8xbf16>, vector<8x56xbf16>, vector<8x56xf32> -> vector<8x56xf32>
    %8 = arith.mulf %7, %4 : vector<8x56xf32>
    %9 = vector.extract_strided_slice %2 {offsets = [8, 0], sizes = [8, 56], strides = [1, 1]} : vector<16x56xf32> to vector<8x56xf32>
    %10 = arith.truncf %9 : vector<8x56xf32> to vector<8x56xbf16>
    %cst_8 = arith.constant dense<0.000000e+00> : vector<8x56xf32>
    %11 = tpu.matmul %3, %10, %cst_8 {dimension_numbers = #tpu.dot_dimension_numbers<[1], [0], [0], [1], [0, 0, 1, 1], [], []>} : vector<8x8xbf16>, vector<8x56xbf16>, vector<8x56xf32> -> vector<8x56xf32>
    %12 = arith.mulf %11, %4 : vector<8x56xf32>
    %13 = tpu.concatenate %8, %12 in 0 : vector<8x56xf32>, vector<8x56xf32> -> vector<16x56xf32>
    %14 = arith.truncf %13 : vector<16x56xf32> to vector<16x56xbf16>
    %c0_9 = arith.constant 0 : index
    %c0_10 = arith.constant 0 : index
    %15 = vector.load %arg5[%c0_9, %c0_10] : memref<56x256xbf16, #tpu.memory_space<vmem>>, vector<56x256xbf16>
    %cst_11 = arith.constant dense<0.000000e+00> : vector<16x256xf32>
    %16 = tpu.matmul %14, %15, %cst_11 {dimension_numbers = #tpu.dot_dimension_numbers<[1], [0], [0], [1], [0, 0, 1, 1], [], []>} : vector<16x56xbf16>, vector<56x256xbf16>, vector<16x256xf32> -> vector<16x256xf32>
    %c0_12 = arith.constant 0 : index
    %c0_13 = arith.constant 0 : index
    %17 = vector.load %arg6[%c0_12, %c0_13] : memref<16x1xf32, #tpu.memory_space<vmem>>, vector<16x1xf32>
    %18 = vector.broadcast %17 : vector<16x1xf32> to vector<16x256xf32>
    %19 = arith.addf %16, %18 : vector<16x256xf32>
    %c0_14 = arith.constant 0 : index
    %c0_15 = arith.constant 0 : index
    %20 = vector.load %arg7[%c0_14, %c0_15] : memref<16x256xf32, #tpu.memory_space<vmem>>, vector<16x256xf32>
    tpu.vector_store %arg7[%c0_14, %c0_15], %19 {strides = array<i32>} : memref<16x256xf32, #tpu.memory_space<vmem>>, vector<16x256xf32>,
    return
  }
  func.func @transform_0(%arg0: i32) -> (i32, i32) {
    %c0_i32 = arith.constant 0 : i32
    %c0_i32_0 = arith.constant 0 : i32
    return %arg0, %c0_i32 : i32, i32
  }
  func.func @transform_1(%arg0: i32) -> (i32, i32) {
    %c0_i32 = arith.constant 0 : i32
    %c0_i32_0 = arith.constant 0 : i32
    %c0_i32_1 = arith.constant 0 : i32
    return %c0_i32, %c0_i32_0 : i32, i32
  }
  func.func @transform_2(%arg0: i32) -> (i32, i32) {
    %c0_i32 = arith.constant 0 : i32
    %c0_i32_0 = arith.constant 0 : i32
    %c0_i32_1 = arith.constant 0 : i32
    return %c0_i32, %c0_i32_0 : i32, i32
  }
  func.func @transform_3(%arg0: i32) -> (i32, i32) {
    %c0_i32 = arith.constant 0 : i32
    %c0_i32_0 = arith.constant 0 : i32
    %c0_i32_1 = arith.constant 0 : i32
    return %c0_i32, %c0_i32_0 : i32, i32
  }
  func.func @transform_4(%arg0: i32) -> (i32, i32) {
    %c0_i32 = arith.constant 0 : i32
    %c0_i32_0 = arith.constant 0 : i32
    %c0_i32_1 = arith.constant 0 : i32
    return %c0_i32, %c0_i32_0 : i32, i32
  }
  func.func @transform_5(%arg0: i32) -> (i32, i32) {
    %c0_i32 = arith.constant 0 : i32
    %c0_i32_0 = arith.constant 0 : i32
    %c0_i32_1 = arith.constant 0 : i32
    return %c0_i32, %c0_i32_0 : i32, i32
  }
  func.func @transform_6(%arg0: i32) -> (i32, i32) {
    %c0_i32 = arith.constant 0 : i32
    %c0_i32_0 = arith.constant 0 : i32
    return %arg0, %c0_i32 : i32, i32
  }
}

</mosaic_0001>

<bundles_post_ra>
// kernel: tpu_custom_call.1
= control target key start
LH: loop header
LB: loop body
LE: loop exit
PB: predicated region body
PF: predicated region fallthrough
CT: control target
= control target key end

     0   :  { %s663_s0 = inlined_call_operand.vmem [shape: bf16[16,256], index: 0, kind: input, shape index: {}]   ;;  %s664_s1 = inlined_call_operand.vmem [shape: bf16[256,56], index: 1, kind: input, shape index: {}]   ;;  %s665_s2 = inlined_call_operand.vmem [shape: bf16[8,8], index: 2, kind: input, shape index: {}]   ;;  %s666_s3 = inlined_call_operand.vmem [shape: f32[8,56], index: 3, kind: input, shape index: {}]   ;;  %s667_s4 = inlined_call_operand.vmem [shape: bf16[56,256], index: 4, kind: input, shape index: {}]   ;;  %s668_s5 = inlined_call_operand.vmem [shape: f32[16,1], index: 5, kind: input, shape index: {}]   ;;  %s669_s6 = inlined_call_operand.hbm [shape: f32[16,256], index: 6, kind: output, shape index: {}]  }
   0x1   :  { %v460_v0 = vld [vmem:[%s664_s1 + $0x38] sm:$0xff]  ;;  %v459_v2 = vld [vmem:[%s664_s1 + $0x30] sm:$0xff]  ;;  %v458_v4 = vld [vmem:[%s664_s1 + $0x28] sm:$0xff] }
   0x2   :  { %v468_v1 = vld [vmem:[%s664_s1 + $0x78] sm:$0xff]  ;;  %165 = vmatpush.bf16.msra.mxu0 %v460_v0  ;;  %v467_v3 = vld [vmem:[%s664_s1 + $0x70] sm:$0xff]  ;;  %v466_v5 = vld [vmem:[%s664_s1 + $0x68] sm:$0xff] }
   0x3   :  { %179 = vmatpush.bf16.msra.mxu1 %v468_v1 }
   0x6   :  { %166 = vmatpush.bf16.msra.mxu0 %v459_v2 }
   0x7   :  { %180 = vmatpush.bf16.msra.mxu1 %v467_v3 }
   0x8   :  { %11 = vsyncpa [#allocation3], 0  ;;  %v457_v6 = vld [vmem:[%s664_s1 + $0x20] sm:$0xff]  ;;  %v456_v8 = vld [vmem:[%s664_s1 + $0x18] sm:$0xff]  ;;  %vm200_vm0 = vcmask 1043456   ;;  %vm196_vm1 = vcmask 64512  }
   0x9   :  { %v465_v7 = vld [vmem:[%s664_s1 + $0x60] sm:$0xff]  ;;  %v464_v9 = vld [vmem:[%s664_s1 + $0x58] sm:$0xff]  ;;  %v455_v10 = vld [vmem:[%s664_s1 + $0x10] sm:$0xff]  ;;  %v506_v59 = vmov 0   ;;  %vm291_vm2 = vcmask 457728   ;;  %s339_s18 = sshll.u32 %s669_s6, 4  ;;  %s340_s18 = int_to_ptr.hbm [resolvable:$true] %s339_s18 }
   0xa   :  { %167 = vmatpush.bf16.msra.mxu0 %v458_v4  ;;  %v463_v11 = vld [vmem:[%s664_s1 + $0x50] sm:$0xff]  ;;  %v454_v12 = vld [vmem:[%s664_s1 + $0x8] sm:$0xff]  ;;  %v453_v14 = vld [vmem:[%s664_s1] sm:$0xff]  ;;  %479 = vset.pattern.permute.xlu0 %v506_v59  ;;  %s508_s19 = smov 256   ;;  %s509_s20 = smov 16  }
   0xb   :  { %181 = vmatpush.bf16.msra.mxu1 %v466_v5  ;;  %v462_v13 = vld [vmem:[%s664_s1 + $0x48] sm:$0xff]  ;;  %v461_v15 = vld [vmem:[%s664_s1 + $0x40] sm:$0xff]  ;;  %v243_v22 = vld [vmem:[%s667_s4 + $0x30] sm:$0xff] }
   0xc   :  { %v353_v16 = vld [vmem:[%s663_s0] sm:$0xf]  ;;  %v452_v17 = vld [vmem:[%s663_s0 + $0x4] sm:$0xf0]  ;;  %v451_v18 = vld [vmem:[%s663_s0 + $0x4] sm:$0xf]  ;;  %v275_v23 = vunpack.c.l.b16 %v243_v22  ;;  %v276_v30 = vunpack.c.h.b16 %v243_v22 }
   0xd   :  { %v355_v19 = vld [vmem:[%s663_s0 + $0x8] sm:$0xf0]  ;;  %v354_v20 = vor.u32 %v452_v17, %v353_v16  ;;  %v193_v32 = vld [vmem:[%s665_s2] sm:$0xf]  ;;  %v474_v41 = vld [vmem:[%s667_s4 + $0x24] sm:$0xf0] }
   0xe   :  { %168 = vmatpush.bf16.msra.mxu0 %v457_v6  ;;  %v358_v21 = vor.u32 %v451_v18, %v355_v19  ;;  %v283_v26 = vpack.c.b16 %v275_v23, %v275_v23  ;;  %v284_v35 = vpack.c.b16 %v276_v30, %v276_v30  ;;  %v443_v40 = vld [vmem:[%s667_s4 + $0x20] sm:$0xf]  ;;  %v473_v42 = vld [vmem:[%s667_s4 + $0x24] sm:$0xf]  ;;  %v445_v44 = vld [vmem:[%s667_s4 + $0x28] sm:$0xf0] }
   0xf   :  { %182 = vmatpush.bf16.msra.mxu1 %v465_v7  ;;  %v444_v43 = vor.u32 %v474_v41, %v443_v40  ;;  %v448_v45 = vor.u32 %v473_v42, %v445_v44  ;;  %v435_v46 = vld [vmem:[%s667_s4 + $0x10] sm:$0xf]  ;;  %v472_v47 = vld [vmem:[%s667_s4 + $0x14] sm:$0xf0]  ;;  %v471_v48 = vld [vmem:[%s667_s4 + $0x14] sm:$0xf] }
  0x10   :  { %v296_v29 = vsel %vm200_vm0, %v283_v26, 0  ;;  %v299_v38 = vsel %vm200_vm0, %v284_v35, 0  ;;  %v436_v49 = vor.u32 %v472_v47, %v435_v46  ;;  %v437_v50 = vld [vmem:[%s667_s4 + $0x18] sm:$0xf0]  ;;  %v427_v52 = vld [vmem:[%s667_s4] sm:$0xf] }
  0x11   :  { %v440_v51 = vor.u32 %v471_v48, %v437_v50  ;;  %v470_v53 = vld [vmem:[%s667_s4 + $0x4] sm:$0xf0]  ;;  %v469_v54 = vld [vmem:[%s667_s4 + $0x4] sm:$0xf]  ;;  %v429_v56 = vld [vmem:[%s667_s4 + $0x8] sm:$0xf0] }
  0x12   :  { %169 = vmatpush.bf16.msra.mxu0 %v456_v8  ;;  %v428_v55 = vor.u32 %v470_v53, %v427_v52  ;;  %v432_v57 = vor.u32 %v469_v54, %v429_v56  ;;  %v244_v58 = vld [vmem:[%s668_s5] sm:$0xff]  ;;  %v245_v60 = vld [vmem:[%s668_s5 + $0x8] sm:$0xff]  ;;  %s507_s4 = smov [#allocation2]  }
  0x13   :  { %183 = vmatpush.bf16.msra.mxu1 %v464_v9  ;;  %248 = vperm.xlu0 %479, %v244_v58   ;;  %v194_v62 = vld [vmem:[%s666_s3] sm:$0xff]  ;;  %s337_s5 = sshll.u32 %s507_s4, 4  ;;  %s338_s5 = int_to_ptr.vmem [resolvable:$true] %s337_s5 }
  0x16   :  { %170 = vmatpush.bf16.msra.mxu0 %v455_v10 }
  0x17   :  { %184 = vmatpush.bf16.msra.mxu1 %v463_v11 }
  0x1a   :  { %171 = vmatpush.bf16.msra.mxu0 %v454_v12 }
  0x1b   :  { %185 = vmatpush.bf16.msra.mxu1 %v462_v13  ;;  %253 = vperm.xlu0 %479, %v245_v60  }
  0x1e   :  { %172 = vmatpush.bf16.msra.mxu0 %v453_v14 }
  0x1f   :  { %186 = vmatpush.bf16.msra.mxu1 %v461_v15 }
  0x21   :  { %173 = vmatmul.bf16.vlgmr.msra.gmra.mxu0 %v354_v20 }
  0x22   :  { %187 = vmatmul.bf16.vlgmr.msra.gmra.mxu1 %v358_v21 }
  0x85   :  { %v249_v5 = vpop.permute.xlu0 %248 }
  0x8d   :  { %v254_v10 = vpop.permute.xlu0 %253 }
  0x9e   :  { %v174_v24 = vpop.f32.mrf.mxu0 }
  0x9f   :  { %v188_v25 = vpop.f32.mrf.mxu1 }
  0xa0   :  { %v189_v27 = vadd.f32 %v188_v25, %v174_v24 }
  0xa2   :  { %v195_v28 = vpack.c.bf16 %v189_v27, %v189_v27 }
  0xa4   :  { %v202_v31 = vsel %vm200_vm0, %v195_v28, 0 }
  0xa5   :  { %211 = vmatpush.bf16.msra.mxu2 %v202_v31 }
  0xa6   :  { %v176_v33 = vpop.f32.mrf.mxu0 }
  0xa7   :  { %v190_v34 = vpop.f32.mrf.mxu1 }
  0xa8   :  { %v191_v36 = vadd.f32 %v190_v34, %v176_v33  ;;  %423 = vmatmul.msk.bf16.vlgmr.msra.gmra.mxu2 %vm196_vm1, %v193_v32 }
  0xa9   :  { %305 = vmatpush.bf16.msrb.mxu2 %v296_v29 }
  0xaa   :  { %v218_v37 = vpack.c.bf16 %v191_v36, %v191_v36 }
  0xac   :  { %v220_v39 = vsel %vm200_vm0, %v218_v37, 0 }
  0xad   :  { %229 = vmatpush.bf16.msra.mxu3 %v220_v39  ;;  %306 = vmatpush.bf16.msrb.mxu2 %v444_v43 }
  0xb0   :  { %424 = vmatmul.msk.bf16.vlgmr.msra.gmra.mxu3 %vm196_vm1, %v193_v32 }
  0xb1   :  { %319 = vmatpush.bf16.msrb.mxu3 %v299_v38  ;;  %307 = vmatpush.bf16.msrb.mxu2 %v436_v49 }
  0xb5   :  { %320 = vmatpush.bf16.msrb.mxu3 %v448_v45  ;;  %308 = vmatpush.bf16.msrb.mxu2 %v428_v55 }
  0xb9   :  { %321 = vmatpush.bf16.msrb.mxu3 %v440_v51 }
  0xbd   :  { %322 = vmatpush.bf16.msrb.mxu3 %v432_v57 }
 0x12b   :  { %v213_v61 = vpop.f32.mrf.mxu2 }
 0x12c   :  { %v217_v63 = vmul.f32 %v213_v61, %v194_v62 }
 0x133   :  { %v215_v0 = vpop.f32.mrf.mxu2  ;;  %v231_v1 = vpop.f32.mrf.mxu3 }
 0x134   :  { %v235_v2 = vmul.f32 %v231_v1, %v194_v62 }
 0x136   :  { %v236_v3 = vpack.c.bf16 %v235_v2, %v217_v63 }
 0x138   :  { %449 = vmatmul.msk.bf16.vlgmr.msrb.gmra.mxu2 %vm291_vm2, %v236_v3  ;;  %450 = vmatmul.msk.bf16.vlgmr.msrb.gmra.mxu3 %vm291_vm2, %v236_v3 }
 0x13b   :  { %v233_v4 = vpop.f32.mrf.mxu3 }
 0x1bb   :  { %v310_v6 = vpop.f32.mrf.mxu2  ;;  %v324_v7 = vpop.f32.mrf.mxu3 }
 0x1bc   :  { %v311_v8 = vadd.f32 %v310_v6, %v249_v5  ;;  %v325_v9 = vadd.f32 %v324_v7, %v249_v5 }
 0x1be   :  { %329 = vst [vmem:[#allocation2] sm:$0xff] %v311_v8 }
 0x1bf   :  { %330 = vst [vmem:[#allocation2 + $0x8] sm:$0xff] %v325_v9 }
 0x1c3   :  { %v312_v11 = vpop.f32.mrf.mxu2  ;;  %v326_v12 = vpop.f32.mrf.mxu3 }
 0x1c4   :  { %v313_v13 = vadd.f32 %v312_v11, %v254_v10  ;;  %v327_v14 = vadd.f32 %v326_v12, %v254_v10 }
 0x1c6   :  { %331 = vst [vmem:[#allocation2 + $0x10] sm:$0xff] %v313_v13 }
 0x1c7   :  { %332 = vst [vmem:[#allocation2 + $0x18] sm:$0xff] %v327_v14 }
 0x1c8   :  { %345 = dma.vmem_to_hbm [thread:$0]  %s338_s5, 512, %s340_s18, [#allocation3], %s508_s19, %s508_s19, %s509_s20  }
 0x1c9   :  { %504 = dma.done.wait [#allocation3], 512  }
 0x1ca   :  { %505 = vsyncadd [#allocation3], 4294966784 }
 0x1cb   :  { %350 = vsyncpa [#allocation3], 1 }

</bundles_post_ra>
